<compile_context>
chip_gen: v6e
topology: v6e:2x2x1
jax: 0.10.0
libtpu: 0.0.40
codegen_flags: <defaults>
</compile_context>

<pallas_src>
import functools

import jax
import jax.numpy as jnp
from jax.experimental import pallas as pl
from jax.experimental.pallas import tpu as pltpu

LANE = 128      # TPU vreg lane width (last dim)
SUBLANE = 8     # TPU vreg sublane count (second-to-last dim)


def _round_up(n, m):
    return ((n + m - 1) // m) * m


def mlp_kernel(x_ref, w1_ref, b1_ref, w2_ref, b2_ref, w3_ref, b3_ref, o_ref):
    # x tile: (TB, IN_P) compute dtype; weights: compute dtype; biases: f32 (1, N).
    x = x_ref[...]

    # Layer 1: Linear (MXU, f32 accumulation) + bias + ReLU in f32.
    h1 = jnp.dot(x, w1_ref[...], preferred_element_type=jnp.float32)
    h1 = jnp.maximum(h1 + b1_ref[...], 0.0)
    # Dropout -> identity in eval mode.

    # Layer 2: Linear + bias + ReLU.
    h2 = jnp.dot(h1.astype(w2_ref.dtype), w2_ref[...],
                 preferred_element_type=jnp.float32)
    h2 = jnp.maximum(h2 + b2_ref[...], 0.0)
    # Dropout -> identity in eval mode.

    # Layer 3: Linear + bias + Sigmoid (EUP, f32).
    logits = jnp.dot(h2.astype(w3_ref.dtype), w3_ref[...],
                     preferred_element_type=jnp.float32)
    logits = logits + b3_ref[...]
    o_ref[...] = jax.nn.sigmoid(logits).astype(o_ref.dtype)


@functools.partial(jax.jit, static_argnames=("block_b", "compute_dtype"))
def mlp_classifier_forward(x, params, *, block_b=256, compute_dtype=jnp.bfloat16):
    """x: [B, input_size] float32. params: dict of w1,b1,w2,b2,w3,b3 (f32, [in,out])."""
    w1, b1, w2, b2, w3, b3 = (params["w1"], params["b1"], params["w2"],
                              params["b2"], params["w3"], params["b3"])
    B, input_size = x.shape
    hidden_size = w1.shape[1]
    output_size = w3.shape[1]

    # Lane-pad feature dims; sublane-pad / tile the batch dim.
    in_p = _round_up(input_size, LANE)
    hid_p = _round_up(hidden_size, LANE)
    out_p = _round_up(output_size, LANE)
    tb = _round_up(min(block_b, _round_up(B, SUBLANE)), SUBLANE)
    b_p = _round_up(B, tb)
    grid = (pl.cdiv(b_p, tb),)

    def pad2(a, rows, cols):
        return jnp.pad(a, ((0, rows - a.shape[0]), (0, cols - a.shape[1])))

    # Zero-padding keeps semantics exact: padded hidden lanes stay 0 through
    # ReLU and contribute nothing downstream; padded output lanes are sliced off.
    x_p = pad2(x, b_p, in_p).astype(compute_dtype)
    w1_p = pad2(w1, in_p, hid_p).astype(compute_dtype)
    w2_p = pad2(w2, hid_p, hid_p).astype(compute_dtype)
    w3_p = pad2(w3, hid_p, out_p).astype(compute_dtype)
    b1_p = pad2(b1, 1, hid_p).astype(jnp.float32)
    b2_p = pad2(b2, 1, hid_p).astype(jnp.float32)
    b3_p = pad2(b3, 1, out_p).astype(jnp.float32)

    itemsize = jnp.dtype(compute_dtype).itemsize
    weight_bytes = (in_p * hid_p + hid_p * hid_p + hid_p * out_p) * itemsize
    bias_bytes = (2 * hid_p + out_p) * 4
    stream_bytes = 2 * (tb * in_p * itemsize + tb * out_p * 4)   # double-buffered x/out tiles
    live_bytes = 2 * tb * hid_p * 4                              # h1/h2 f32 intermediates
    vmem_limit = int(min(weight_bytes + bias_bytes + stream_bytes + live_bytes
                         + (8 << 20), 60 << 20))

    flops = 2 * b_p * (in_p * hid_p + hid_p * hid_p + hid_p * out_p)
    bytes_accessed = (b_p * in_p * itemsize + weight_bytes + bias_bytes
                      + b_p * out_p * 4)
    cost = pl.CostEstimate(flops=flops, transcendentals=b_p * out_p,
                           bytes_accessed=bytes_accessed)

    out_padded = pl.pallas_call(
        mlp_kernel,
        out_shape=jax.ShapeDtypeStruct((b_p, out_p), jnp.float32),
        grid=grid,
        in_specs=[
            pl.BlockSpec((tb, in_p), lambda i: (i, 0)),       # x: streams per tile
            pl.BlockSpec((in_p, hid_p), lambda i: (0, 0)),    # w1: VMEM-resident
            pl.BlockSpec((1, hid_p), lambda i: (0, 0)),       # b1
            pl.BlockSpec((hid_p, hid_p), lambda i: (0, 0)),   # w2
            pl.BlockSpec((1, hid_p), lambda i: (0, 0)),       # b2
            pl.BlockSpec((hid_p, out_p), lambda i: (0, 0)),   # w3
            pl.BlockSpec((1, out_p), lambda i: (0, 0)),       # b3
        ],
        out_specs=pl.BlockSpec((tb, out_p), lambda i: (i, 0)),
        compiler_params=pltpu.CompilerParams(
            dimension_semantics=("parallel",),
            vmem_limit_bytes=vmem_limit,
        ),
        cost_estimate=cost,
    )(x_p, w1_p, b1_p, w2_p, b2_p, w3_p, b3_p)

    return out_padded[:B, :output_size]


def init_params(key, input_size, hidden_size, output_size):
    """Deterministic init mimicking PyTorch nn.Linear: U(-1/sqrt(fan_in), 1/sqrt(fan_in))."""
    ks = jax.random.split(key, 6)

    def linear(kw, kb, fan_in, fan_out):
        bound = 1.0 / jnp.sqrt(jnp.float32(fan_in))
        w = jax.random.uniform(kw, (fan_in, fan_out), jnp.float32, -bound, bound)
        b = jax.random.uniform(kb, (1, fan_out), jnp.float32, -bound, bound)
        return w, b

    w1, b1 = linear(ks[0], ks[1], input_size, hidden_size)
    w2, b2 = linear(ks[2], ks[3], hidden_size, hidden_size)
    w3, b3 = linear(ks[4], ks[5], hidden_size, output_size)
    return {"w1": w1, "b1": b1, "w2": w2, "b2": b2, "w3": w3, "b3": b3}


def reference_forward(x, params):
    """Plain-JAX f32 reference (eval-mode dropout == identity)."""
    hp = jax.lax.Precision.HIGHEST
    h1 = jnp.maximum(jnp.dot(x, params["w1"], precision=hp) + params["b1"], 0.0)
    h2 = jnp.maximum(jnp.dot(h1, params["w2"], precision=hp) + params["b2"], 0.0)
    return jax.nn.sigmoid(jnp.dot(h2, params["w3"], precision=hp) + params["b3"])


if __name__ == "__main__":
    # Small shapes consistent with the module: batch=2, input=16, hidden=32, output=8
    B, INPUT, HIDDEN, OUTPUT = 2, 16, 32, 8

    key = jax.random.PRNGKey(0)
    k_x, k_p = jax.random.split(key)
    x = jax.random.normal(k_x, (B, INPUT), jnp.float32)
    params = init_params(k_p, INPUT, HIDDEN, OUTPUT)

    ref = reference_forward(x, params)

    # f32 compute path: tight check.
    out_f32 = jax.block_until_ready(
        mlp_classifier_forward(x, params, compute_dtype=jnp.float32))
    assert out_f32.shape == (B, OUTPUT)
    assert jnp.allclose(out_f32, ref, atol=1e-4, rtol=1e-4)

    # bf16 compute path (the performance configuration): looser check
    # (sigmoid output in [0,1]; bf16 mantissa -> ~1e-2 logit error worst case).
    out_bf16 = jax.block_until_ready(
        mlp_classifier_forward(x, params, compute_dtype=jnp.bfloat16))
    assert out_bf16.shape == (B, OUTPUT)
    assert jnp.allclose(out_bf16, ref, atol=2e-2, rtol=2e-2)

    print("KERNEL_OK")
</pallas_src>

<mosaic_0001>
module attributes {stable_mosaic.version = 11 : i64} {
  func.func @mlp_kernel(%arg0: i32, %arg1: memref<8x128xf32, #tpu.memory_space<vmem>>, %arg2: memref<128x128xf32, #tpu.memory_space<vmem>>, %arg3: memref<1x128xf32, #tpu.memory_space<vmem>>, %arg4: memref<128x128xf32, #tpu.memory_space<vmem>>, %arg5: memref<1x128xf32, #tpu.memory_space<vmem>>, %arg6: memref<128x128xf32, #tpu.memory_space<vmem>>, %arg7: memref<1x128xf32, #tpu.memory_space<vmem>>, %arg8: memref<8x128xf32, #tpu.memory_space<vmem>>) attributes {dimension_semantics = [#tpu.dimension_semantics<parallel>], iteration_bounds = array<i64: 1>, scalar_prefetch = 0 : i64, scratch_operands = 0 : i64, tpu.core_type = #tpu.core_type<tc>, window_params = [{transform_indices = @transform_0, window_bounds = array<i64: 8, 128>}, {pipeline_mode = #tpu.pipeline_mode<synchronous>, transform_indices = @transform_1, window_bounds = array<i64: 128, 128>}, {pipeline_mode = #tpu.pipeline_mode<synchronous>, transform_indices = @transform_2, window_bounds = array<i64: 1, 128>}, {pipeline_mode = #tpu.pipeline_mode<synchronous>, transform_indices = @transform_3, window_bounds = array<i64: 128, 128>}, {pipeline_mode = #tpu.pipeline_mode<synchronous>, transform_indices = @transform_4, window_bounds = array<i64: 1, 128>}, {pipeline_mode = #tpu.pipeline_mode<synchronous>, transform_indices = @transform_5, window_bounds = array<i64: 128, 128>}, {pipeline_mode = #tpu.pipeline_mode<synchronous>, transform_indices = @transform_6, window_bounds = array<i64: 1, 128>}, {transform_indices = @transform_7, window_bounds = array<i64: 8, 128>}]} {
    %c0 = arith.constant 0 : index
    %c0_0 = arith.constant 0 : index
    %0 = vector.load %arg1[%c0, %c0_0] : memref<8x128xf32, #tpu.memory_space<vmem>>, vector<8x128xf32>
    %c0_1 = arith.constant 0 : index
    %c0_2 = arith.constant 0 : index
    %1 = vector.load %arg2[%c0_1, %c0_2] : memref<128x128xf32, #tpu.memory_space<vmem>>, vector<128x128xf32>
    %cst = arith.constant dense<0.000000e+00> : vector<8x128xf32>
    %2 = tpu.matmul %0, %1, %cst {dimension_numbers = #tpu.dot_dimension_numbers<[1], [0], [0], [1], [0, 0, 1, 1], [], []>} : vector<8x128xf32>, vector<128x128xf32>, vector<8x128xf32> -> vector<8x128xf32>
    %c0_3 = arith.constant 0 : index
    %c0_4 = arith.constant 0 : index
    %3 = vector.load %arg3[%c0_3, %c0_4] : memref<1x128xf32, #tpu.memory_space<vmem>>, vector<1x128xf32>
    %4 = vector.broadcast %3 : vector<1x128xf32> to vector<8x128xf32>
    %5 = arith.addf %2, %4 : vector<8x128xf32>
    %cst_5 = arith.constant 0.000000e+00 : f32
    %6 = vector.broadcast %cst_5 : f32 to vector<8x128xf32>
    %7 = arith.maximumf %5, %6 : vector<8x128xf32>
    %c0_6 = arith.constant 0 : index
    %c0_7 = arith.constant 0 : index
    %8 = vector.load %arg4[%c0_6, %c0_7] : memref<128x128xf32, #tpu.memory_space<vmem>>, vector<128x128xf32>
    %cst_8 = arith.constant dense<0.000000e+00> : vector<8x128xf32>
    %9 = tpu.matmul %7, %8, %cst_8 {dimension_numbers = #tpu.dot_dimension_numbers<[1], [0], [0], [1], [0, 0, 1, 1], [], []>} : vector<8x128xf32>, vector<128x128xf32>, vector<8x128xf32> -> vector<8x128xf32>
    %c0_9 = arith.constant 0 : index
    %c0_10 = arith.constant 0 : index
    %10 = vector.load %arg5[%c0_9, %c0_10] : memref<1x128xf32, #tpu.memory_space<vmem>>, vector<1x128xf32>
    %11 = vector.broadcast %10 : vector<1x128xf32> to vector<8x128xf32>
    %12 = arith.addf %9, %11 : vector<8x128xf32>
    %cst_11 = arith.constant 0.000000e+00 : f32
    %13 = vector.broadcast %cst_11 : f32 to vector<8x128xf32>
    %14 = arith.maximumf %12, %13 : vector<8x128xf32>
    %c0_12 = arith.constant 0 : index
    %c0_13 = arith.constant 0 : index
    %15 = vector.load %arg6[%c0_12, %c0_13] : memref<128x128xf32, #tpu.memory_space<vmem>>, vector<128x128xf32>
    %cst_14 = arith.constant dense<0.000000e+00> : vector<8x128xf32>
    %16 = tpu.matmul %14, %15, %cst_14 {dimension_numbers = #tpu.dot_dimension_numbers<[1], [0], [0], [1], [0, 0, 1, 1], [], []>} : vector<8x128xf32>, vector<128x128xf32>, vector<8x128xf32> -> vector<8x128xf32>
    %c0_15 = arith.constant 0 : index
    %c0_16 = arith.constant 0 : index
    %17 = vector.load %arg7[%c0_15, %c0_16] : memref<1x128xf32, #tpu.memory_space<vmem>>, vector<1x128xf32>
    %18 = vector.broadcast %17 : vector<1x128xf32> to vector<8x128xf32>
    %19 = arith.addf %16, %18 : vector<8x128xf32>
    %20 = arith.negf %19 : vector<8x128xf32>
    %21 = math.exp %20 : vector<8x128xf32>
    %cst_17 = arith.constant 1.000000e+00 : f32
    %22 = vector.broadcast %cst_17 : f32 to vector<8x128xf32>
    %23 = arith.addf %22, %21 : vector<8x128xf32>
    %24 = arith.divf %22, %23 : vector<8x128xf32>
    %c0_18 = arith.constant 0 : index
    %c0_19 = arith.constant 0 : index
    %25 = vector.load %arg8[%c0_18, %c0_19] : memref<8x128xf32, #tpu.memory_space<vmem>>, vector<8x128xf32>
    tpu.vector_store %arg8[%c0_18, %c0_19], %24 {strides = array<i32>} : memref<8x128xf32, #tpu.memory_space<vmem>>, vector<8x128xf32>,
    return
  }
  func.func @transform_0(%arg0: i32) -> (i32, i32) {
    %c0_i32 = arith.constant 0 : i32
    %c0_i32_0 = arith.constant 0 : i32
    return %arg0, %c0_i32 : i32, i32
  }
  func.func @transform_1(%arg0: i32) -> (i32, i32) {
    %c0_i32 = arith.constant 0 : i32
    %c0_i32_0 = arith.constant 0 : i32
    %c0_i32_1 = arith.constant 0 : i32
    return %c0_i32, %c0_i32_0 : i32, i32
  }
  func.func @transform_2(%arg0: i32) -> (i32, i32) {
    %c0_i32 = arith.constant 0 : i32
    %c0_i32_0 = arith.constant 0 : i32
    %c0_i32_1 = arith.constant 0 : i32
    return %c0_i32, %c0_i32_0 : i32, i32
  }
  func.func @transform_3(%arg0: i32) -> (i32, i32) {
    %c0_i32 = arith.constant 0 : i32
    %c0_i32_0 = arith.constant 0 : i32
    %c0_i32_1 = arith.constant 0 : i32
    return %c0_i32, %c0_i32_0 : i32, i32
  }
  func.func @transform_4(%arg0: i32) -> (i32, i32) {
    %c0_i32 = arith.constant 0 : i32
    %c0_i32_0 = arith.constant 0 : i32
    %c0_i32_1 = arith.constant 0 : i32
    return %c0_i32, %c0_i32_0 : i32, i32
  }
  func.func @transform_5(%arg0: i32) -> (i32, i32) {
    %c0_i32 = arith.constant 0 : i32
    %c0_i32_0 = arith.constant 0 : i32
    %c0_i32_1 = arith.constant 0 : i32
    return %c0_i32, %c0_i32_0 : i32, i32
  }
  func.func @transform_6(%arg0: i32) -> (i32, i32) {
    %c0_i32 = arith.constant 0 : i32
    %c0_i32_0 = arith.constant 0 : i32
    %c0_i32_1 = arith.constant 0 : i32
    return %c0_i32, %c0_i32_0 : i32, i32
  }
  func.func @transform_7(%arg0: i32) -> (i32, i32) {
    %c0_i32 = arith.constant 0 : i32
    %c0_i32_0 = arith.constant 0 : i32
    return %arg0, %c0_i32 : i32, i32
  }
}

</mosaic_0001>

<bundles_post_ra>
// kernel: mlp_classifier_forward.1
= control target key start
LH: loop header
LB: loop body
LE: loop exit
PB: predicated region body
PF: predicated region fallthrough
CT: control target
= control target key end

     0   :  { %v485_v0 = vmov 0.0   ;;  %vm486_vm0 = vmmov 0   ;;  %s740_s1 = inlined_call_operand.vmem [shape: f32[128,128], index: 1, kind: input, shape index: {}]   ;;  %s741_s3 = inlined_call_operand.vmem [shape: f32[128,128], index: 3, kind: input, shape index: {}]   ;;  %s742_s0 = inlined_call_operand.vmem [shape: f32[8,128], index: 0, kind: input, shape index: {}]   ;;  %s743_s5 = inlined_call_operand.vmem [shape: f32[128,128], index: 5, kind: input, shape index: {}]   ;;  %s744_s2 = inlined_call_operand.vmem [shape: f32[1,128], index: 2, kind: input, shape index: {}]   ;;  %s745_s4 = inlined_call_operand.vmem [shape: f32[1,128], index: 4, kind: input, shape index: {}]   ;;  %s746_s6 = inlined_call_operand.vmem [shape: f32[1,128], index: 6, kind: input, shape index: {}]   ;;  %s747_s7 = inlined_call_operand.vmem [shape: f32[8,128], index: 7, kind: output, shape index: {}]  }
   0x1   :  { %374 = vmatprep.subr.mxu0 %v485_v0  ;;  %v42_v1 = vld [vmem:[%s740_s1 + $0x78] sm:$0xff]  ;;  %v41_v2 = vld [vmem:[%s740_s1 + $0x70] sm:$0xff]  ;;  %406 = vmatprep.mubr.msk.f32.mxu0 %vm486_vm0, %v485_v0  ;;  %v40_v3 = vld [vmem:[%s740_s1 + $0x68] sm:$0xff] }
   0x2   :  { %375 = vmatpush3.msra.mxu0 %v42_v1  ;;  %409 = vmatprep.subr.mxu1 %v485_v0  ;;  %v39_v4 = vld [vmem:[%s740_s1 + $0x60] sm:$0xff]  ;;  %v136_v5 = vld [vmem:[%s741_s3 + $0x78] sm:$0xff]  ;;  %v135_v7 = vld [vmem:[%s741_s3 + $0x70] sm:$0xff] }
   0x3   :  { %376 = vmatprep.subr.mxu0 %v485_v0  ;;  %441 = vmatprep.mubr.msk.f32.mxu1 %vm486_vm0, %v485_v0  ;;  %v38_v6 = vld [vmem:[%s740_s1 + $0x58] sm:$0xff]  ;;  %v134_v8 = vld [vmem:[%s741_s3 + $0x68] sm:$0xff]  ;;  %v37_v9 = vld [vmem:[%s740_s1 + $0x50] sm:$0xff] }
   0x4   :  { %377 = vmatpush3.msra.mxu0 %v41_v2  ;;  %410 = vmatpush3.msra.mxu1 %v136_v5  ;;  %v133_v10 = vld [vmem:[%s741_s3 + $0x60] sm:$0xff]  ;;  %v36_v11 = vld [vmem:[%s740_s1 + $0x48] sm:$0xff]  ;;  %v132_v12 = vld [vmem:[%s741_s3 + $0x58] sm:$0xff] }
   0x5   :  { %378 = vmatprep.subr.mxu0 %v485_v0  ;;  %411 = vmatprep.subr.mxu1 %v485_v0  ;;  %v35_v13 = vld [vmem:[%s740_s1 + $0x40] sm:$0xff]  ;;  %v131_v14 = vld [vmem:[%s741_s3 + $0x50] sm:$0xff]  ;;  %v34_v15 = vld [vmem:[%s740_s1 + $0x38] sm:$0xff] }
   0x6   :  { %379 = vmatpush3.msra.mxu0 %v40_v3  ;;  %412 = vmatpush3.msra.mxu1 %v135_v7  ;;  %v130_v16 = vld [vmem:[%s741_s3 + $0x48] sm:$0xff]  ;;  %v33_v17 = vld [vmem:[%s740_s1 + $0x30] sm:$0xff]  ;;  %v129_v18 = vld [vmem:[%s741_s3 + $0x40] sm:$0xff] }
   0x7   :  { %380 = vmatprep.subr.mxu0 %v485_v0  ;;  %413 = vmatprep.subr.mxu1 %v485_v0  ;;  %v32_v19 = vld [vmem:[%s740_s1 + $0x28] sm:$0xff]  ;;  %v128_v20 = vld [vmem:[%s741_s3 + $0x38] sm:$0xff]  ;;  %v31_v21 = vld [vmem:[%s740_s1 + $0x20] sm:$0xff] }
   0x8   :  { %381 = vmatpush3.msra.mxu0 %v39_v4  ;;  %414 = vmatpush3.msra.mxu1 %v134_v8  ;;  %v127_v22 = vld [vmem:[%s741_s3 + $0x30] sm:$0xff]  ;;  %v30_v23 = vld [vmem:[%s740_s1 + $0x18] sm:$0xff]  ;;  %v126_v24 = vld [vmem:[%s741_s3 + $0x28] sm:$0xff] }
   0x9   :  { %382 = vmatprep.subr.mxu0 %v485_v0  ;;  %415 = vmatprep.subr.mxu1 %v485_v0  ;;  %v29_v25 = vld [vmem:[%s740_s1 + $0x10] sm:$0xff]  ;;  %v125_v26 = vld [vmem:[%s741_s3 + $0x20] sm:$0xff]  ;;  %v28_v27 = vld [vmem:[%s740_s1 + $0x8] sm:$0xff] }
   0xa   :  { %383 = vmatpush3.msra.mxu0 %v38_v6  ;;  %416 = vmatpush3.msra.mxu1 %v133_v10  ;;  %v124_v28 = vld [vmem:[%s741_s3 + $0x18] sm:$0xff]  ;;  %v27_v29 = vld [vmem:[%s740_s1] sm:$0xff]  ;;  %v123_v31 = vld [vmem:[%s741_s3 + $0x10] sm:$0xff] }
   0xb   :  { %384 = vmatprep.subr.mxu0 %v485_v0  ;;  %417 = vmatprep.subr.mxu1 %v485_v0  ;;  %v26_v30 = vld [vmem:[%s742_s0] sm:$0xff]  ;;  %v122_v32 = vld [vmem:[%s741_s3 + $0x8] sm:$0xff]  ;;  %v230_v34 = vld [vmem:[%s743_s5 + $0x78] sm:$0xff] }
   0xc   :  { %385 = vmatpush3.msra.mxu0 %v37_v9  ;;  %418 = vmatpush3.msra.mxu1 %v132_v12  ;;  %v121_v33 = vld [vmem:[%s741_s3] sm:$0xff]  ;;  %v229_v35 = vld [vmem:[%s743_s5 + $0x70] sm:$0xff]  ;;  %v228_v36 = vld [vmem:[%s743_s5 + $0x68] sm:$0xff] }
   0xd   :  { %386 = vmatprep.subr.mxu0 %v485_v0  ;;  %419 = vmatprep.subr.mxu1 %v485_v0  ;;  %v227_v37 = vld [vmem:[%s743_s5 + $0x60] sm:$0xff]  ;;  %v226_v38 = vld [vmem:[%s743_s5 + $0x58] sm:$0xff]  ;;  %v225_v39 = vld [vmem:[%s743_s5 + $0x50] sm:$0xff] }
   0xe   :  { %387 = vmatpush3.msra.mxu0 %v36_v11  ;;  %420 = vmatpush3.msra.mxu1 %v131_v14  ;;  %v224_v40 = vld [vmem:[%s743_s5 + $0x48] sm:$0xff]  ;;  %v223_v41 = vld [vmem:[%s743_s5 + $0x40] sm:$0xff]  ;;  %v222_v42 = vld [vmem:[%s743_s5 + $0x38] sm:$0xff] }
   0xf   :  { %388 = vmatprep.subr.mxu0 %v485_v0  ;;  %421 = vmatprep.subr.mxu1 %v485_v0  ;;  %v221_v43 = vld [vmem:[%s743_s5 + $0x30] sm:$0xff]  ;;  %v220_v44 = vld [vmem:[%s743_s5 + $0x28] sm:$0xff]  ;;  %v219_v45 = vld [vmem:[%s743_s5 + $0x20] sm:$0xff] }
  0x10   :  { %389 = vmatpush3.msra.mxu0 %v35_v13  ;;  %422 = vmatpush3.msra.mxu1 %v130_v16  ;;  %v218_v46 = vld [vmem:[%s743_s5 + $0x18] sm:$0xff]  ;;  %v319_v47 = vld [vmem:[%s744_s2] ss:$0 sm:$0xff]  ;;  %v217_v52 = vld [vmem:[%s743_s5 + $0x10] sm:$0xff] }
  0x11   :  { %390 = vmatprep.subr.mxu0 %v485_v0  ;;  %423 = vmatprep.subr.mxu1 %v485_v0  ;;  %v216_v53 = vld [vmem:[%s743_s5 + $0x8] sm:$0xff]  ;;  %v215_v54 = vld [vmem:[%s743_s5] sm:$0xff] }
  0x12   :  { %391 = vmatpush3.msra.mxu0 %v34_v15  ;;  %424 = vmatpush3.msra.mxu1 %v129_v18  ;;  %v320_v55 = vld [vmem:[%s745_s4] ss:$0 sm:$0xff] }
  0x13   :  { %392 = vmatprep.subr.mxu0 %v485_v0  ;;  %425 = vmatprep.subr.mxu1 %v485_v0  ;;  %v321_v60 = vld [vmem:[%s746_s6] ss:$0 sm:$0xff] }
  0x14   :  { %393 = vmatpush3.msra.mxu0 %v33_v17  ;;  %426 = vmatpush3.msra.mxu1 %v128_v20 }
  0x15   :  { %394 = vmatprep.subr.mxu0 %v485_v0  ;;  %427 = vmatprep.subr.mxu1 %v485_v0 }
  0x16   :  { %395 = vmatpush3.msra.mxu0 %v32_v19  ;;  %428 = vmatpush3.msra.mxu1 %v127_v22 }
  0x17   :  { %396 = vmatprep.subr.mxu0 %v485_v0  ;;  %429 = vmatprep.subr.mxu1 %v485_v0 }
  0x18   :  { %397 = vmatpush3.msra.mxu0 %v31_v21  ;;  %430 = vmatpush3.msra.mxu1 %v126_v24 }
  0x19   :  { %398 = vmatprep.subr.mxu0 %v485_v0  ;;  %431 = vmatprep.subr.mxu1 %v485_v0 }
  0x1a   :  { %399 = vmatpush3.msra.mxu0 %v30_v23  ;;  %432 = vmatpush3.msra.mxu1 %v125_v26 }
  0x1b   :  { %400 = vmatprep.subr.mxu0 %v485_v0  ;;  %433 = vmatprep.subr.mxu1 %v485_v0 }
  0x1c   :  { %401 = vmatpush3.msra.mxu0 %v29_v25  ;;  %434 = vmatpush3.msra.mxu1 %v124_v28 }
  0x1d   :  { %402 = vmatprep.subr.mxu0 %v485_v0  ;;  %435 = vmatprep.subr.mxu1 %v485_v0 }
  0x1e   :  { %403 = vmatpush3.msra.mxu0 %v28_v27  ;;  %436 = vmatpush3.msra.mxu1 %v123_v31 }
  0x1f   :  { %404 = vmatprep.subr.mxu0 %v485_v0  ;;  %437 = vmatprep.subr.mxu1 %v485_v0 }
  0x20   :  { %405 = vmatpush3.msra.mxu0 %v27_v29  ;;  %438 = vmatpush3.msra.mxu1 %v122_v32 }
  0x21   :  { %407 = vmatmul.mubr.f32.vlgmr.msra.gmra.mxu0 %v26_v30  ;;  %444 = vmatprep.subr.mxu0 %v485_v0 }
  0x22   :  { %476 = vmatprep.mubr.msk.f32.mxu0 %vm486_vm0, %v485_v0  ;;  %439 = vmatprep.subr.mxu1 %v485_v0 }
  0x23   :  { %440 = vmatpush3.msra.mxu1 %v121_v33  ;;  %445 = vmatpush3.msra.mxu0 %v230_v34 }
  0x24   :  { %446 = vmatprep.subr.mxu0 %v485_v0 }
  0x25   :  { %447 = vmatpush3.msra.mxu0 %v229_v35 }
  0x26   :  { %448 = vmatprep.subr.mxu0 %v485_v0 }
  0x27   :  { %449 = vmatpush3.msra.mxu0 %v228_v36 }
  0x28   :  { %450 = vmatprep.subr.mxu0 %v485_v0 }
  0x29   :  { %451 = vmatpush3.msra.mxu0 %v227_v37 }
  0x2a   :  { %452 = vmatprep.subr.mxu0 %v485_v0 }
  0x2b   :  { %453 = vmatpush3.msra.mxu0 %v226_v38 }
  0x2c   :  { %454 = vmatprep.subr.mxu0 %v485_v0 }
  0x2d   :  { %455 = vmatpush3.msra.mxu0 %v225_v39 }
  0x2e   :  { %456 = vmatprep.subr.mxu0 %v485_v0 }
  0x2f   :  { %457 = vmatpush3.msra.mxu0 %v224_v40 }
  0x30   :  { %458 = vmatprep.subr.mxu0 %v485_v0 }
  0x31   :  { %459 = vmatpush3.msra.mxu0 %v223_v41 }
  0x32   :  { %460 = vmatprep.subr.mxu0 %v485_v0 }
  0x33   :  { %461 = vmatpush3.msra.mxu0 %v222_v42 }
  0x34   :  { %462 = vmatprep.subr.mxu0 %v485_v0 }
  0x35   :  { %463 = vmatpush3.msra.mxu0 %v221_v43 }
  0x36   :  { %464 = vmatprep.subr.mxu0 %v485_v0 }
  0x37   :  { %465 = vmatpush3.msra.mxu0 %v220_v44 }
  0x38   :  { %466 = vmatprep.subr.mxu0 %v485_v0 }
  0x39   :  { %467 = vmatpush3.msra.mxu0 %v219_v45 }
  0x3a   :  { %468 = vmatprep.subr.mxu0 %v485_v0 }
  0x3b   :  { %469 = vmatpush3.msra.mxu0 %v218_v46 }
  0x3c   :  { %470 = vmatprep.subr.mxu0 %v485_v0 }
  0x3d   :  { %471 = vmatpush3.msra.mxu0 %v217_v52 }
  0x3e   :  { %472 = vmatprep.subr.mxu0 %v485_v0 }
  0x3f   :  { %473 = vmatpush3.msra.mxu0 %v216_v53 }
  0x40   :  { %474 = vmatprep.subr.mxu0 %v485_v0 }
  0x41   :  { %475 = vmatpush3.msra.mxu0 %v215_v54 }
  0xe1   :  { %v116_v48 = vpop.f32.mrf.mxu0 }
  0xe2   :  { %v117_v49 = vadd.f32 %v319_v47, %v116_v48 }
  0xe3   :  { %v408_v50 = vpop.f32.mrf.mxu0 }
  0xe4   :  { %v120_v51 = vmax.f32 %v117_v49, 0.0 }
  0xe6   :  { %442 = vmatmul.mubr.f32.vlgmr.msra.gmra.mxu1 %v120_v51 }
 0x1a6   :  { %v210_v56 = vpop.f32.mrf.mxu1 }
 0x1a7   :  { %v211_v57 = vadd.f32 %v320_v55, %v210_v56 }
 0x1a8   :  { %v443_v58 = vpop.f32.mrf.mxu1 }
 0x1a9   :  { %v214_v59 = vmax.f32 %v211_v57, 0.0 }
 0x1ab   :  { %477 = vmatmul.mubr.f32.vlgmr.msra.gmra.mxu0 %v214_v59 }
 0x26b   :  { %v304_v61 = vpop.f32.mrf.mxu0 }
 0x26c   :  { %v305_v62 = vadd.f32 %v321_v60, %v304_v61 }
 0x26d   :  { %v478_v63 = vpop.f32.mrf.mxu0 }
 0x26e   :  { %v322_v0 = vmul.f32 -1.442695, %v305_v62 }
 0x270   :  { %481 = vpow2.f32 %v322_v0 }
 0x27d   :  { %v482_v1 = vpop.eup %481 }
 0x27e   :  { %v311_v2 = vadd.f32 1.0, %v482_v1 }
 0x280   :  { %483 = vrcp.f32 %v311_v2 }
 0x28d   :  { %v484_v3 = vpop.eup %483 }
 0x28e   :  { %314 = vst [vmem:[%s747_s7] sm:$0xff] %v484_v3 }

</bundles_post_ra>
